<compile_context>
chip_gen: v6e
topology: v6e:2x2x1
jax: 0.10.0
libtpu: 0.0.40
codegen_flags: <defaults>
</compile_context>

<pallas_src>
import numpy as np
import jax
import jax.numpy as jnp
from jax import lax
from jax.experimental import pallas as pl
from jax.experimental.pallas import tpu as pltpu

TAU = 2.0        # spikingjelly LIFNode defaults used by SpikingResformer
V_TH = 1.0
V_RESET = 0.0
BN_EPS = 1e-5
_LANES = 128


def _round_up(a, b):
    return (a + b - 1) // b * b


def _vmem_budget():
    """(capacity, scoped budget) — queried at wrapper/trace time, not import."""
    try:
        cap = int(pltpu.get_tpu_info().vmem_capacity_bytes)
    except Exception:
        cap = 64 * 1024 * 1024            # conservative (v7x-sized) fallback
    frac = 0.7 if cap > (96 << 20) else 0.45   # roomier on 128 MiB parts
    return cap, int(cap * frac)


# --------------------------- LIF spiking activation -------------------------
def _lif_kernel(x_ref, s_ref, v_ref):
    """x_ref: [T, R_tile, 128] f32; s_ref: [T, R_tile, 128] int8; v_ref scratch."""
    T = x_ref.shape[0]
    inv_tau = 1.0 / TAU
    v_ref[...] = jnp.zeros_like(v_ref)
    for t in range(T):                       # T small & static -> full unroll
        v = v_ref[...]
        v = v + (x_ref[t] - (v - V_RESET)) * inv_tau    # charge (decay_input)
        spike = v >= V_TH                                # fire (heaviside fwd)
        s_ref[t] = spike.astype(s_ref.dtype)
        v_ref[...] = jnp.where(spike, jnp.float32(V_RESET), v)   # hard reset


def lif_forward(x, spike_dtype=jnp.int8):
    """x: [T, B, C, H, W] float32 -> spikes (exact 0/1), same shape, int8."""
    T = x.shape[0]
    m = x.size // T
    rows = pl.cdiv(m, _LANES)
    rows32 = _round_up(rows, 32)            # int8 output -> (32,128) tiles

    cap, limit = _vmem_budget()
    spike_bytes = np.dtype(spike_dtype).itemsize
    per_row = _LANES * (2 * T * (4 + spike_bytes) + 4)   # 2-buf in/out + v
    r_cap = max(32, (((limit // 2) // per_row) // 32) * 32)
    target = 1024 if cap > (96 << 20) else 512
    r_tile = min(target, r_cap, rows32)
    # keep >=2 grid tiles when there is enough work (v7x megacore)
    if rows32 >= 64 and rows32 // r_tile < 2:
        r_tile = _round_up(rows32 // 2, 32)
    rows_p = _round_up(rows, r_tile)

    xf = x.reshape(T, m).astype(jnp.float32)
    if rows_p * _LANES != m:
        xf = jnp.pad(xf, ((0, 0), (0, rows_p * _LANES - m)))
    xf = xf.reshape(T, rows_p, _LANES)

    s = pl.pallas_call(
        _lif_kernel,
        out_shape=jax.ShapeDtypeStruct((T, rows_p, _LANES), spike_dtype),
        grid_spec=pltpu.PrefetchScalarGridSpec(
            num_scalar_prefetch=0,
            grid=(rows_p // r_tile,),
            in_specs=[pl.BlockSpec((T, r_tile, _LANES), lambda i: (0, i, 0))],
            out_specs=pl.BlockSpec((T, r_tile, _LANES), lambda i: (0, i, 0)),
            scratch_shapes=[pltpu.VMEM((r_tile, _LANES), jnp.float32)],
        ),
        compiler_params=pltpu.CompilerParams(
            dimension_semantics=("parallel",),
            vmem_limit_bytes=limit),
    )(xf)

    s = s.reshape(T, rows_p * _LANES)[:, :m]
    return s.reshape(x.shape)


# --------------------- Conv3x3 (stride 2, pad 1) + folded BN -----------------
def _make_conv_kernel(tb_tile, c_in, w_r, m_cols):
    """Per grid step: tb_tile images; gather 9 taps in VMEM, one bf16 hi/lo dot."""
    taps = []
    for k in range(9):
        kh, kw = divmod(k, 3)
        rp = 1 if kh == 1 else 0            # row parity (0 = even rows)
        cp = 1 if kw == 1 else 0            # col parity
        dh = 1 if kh == 2 else 0
        dw = 1 if kw == 2 else 0
        taps.append((rp, cp, dh * w_r + dw))

    def kernel(pee_ref, peo_ref, poe_ref, poo_ref,
               whi_ref, wlo_ref, bias_ref, o_ref, pt_ref):
        for i in range(tb_tile):            # static unroll (tb_tile <= 8)
            rows = {
                (0, 0): pee_ref[i].astype(jnp.bfloat16),    # [C_in, L]
                (0, 1): peo_ref[i].astype(jnp.bfloat16),
                (1, 0): poe_ref[i].astype(jnp.bfloat16),
                (1, 1): poo_ref[i].astype(jnp.bfloat16),
            }
            for k, (rp, cp, s) in enumerate(taps):
                # static lane-offset slice; stays entirely in VMEM
                pt_ref[k * c_in:(k + 1) * c_in, :] = rows[(rp, cp)][:, s:s + m_cols]
            p = pt_ref[...]                                  # [9*C_in, M] bf16
            acc = jnp.dot(whi_ref[...], p, preferred_element_type=jnp.float32)
            acc = acc + jnp.dot(wlo_ref[...], p, preferred_element_type=jnp.float32)
            o_ref[i] = (acc + bias_ref[...]).astype(o_ref.dtype)

    return kernel


def conv3x3_bn_forward(spikes, weight, bn_scale, bn_bias):
    """spikes: [T, B, C_in, H, W] (0/1); weight: [C_out, C_in, 3, 3] (OIHW)."""
    T, B, C_in, H, W = spikes.shape
    C_out = weight.shape[0]
    Ho = (H + 2 - 3) // 2 + 1
    Wo = (W + 2 - 3) // 2 + 1
    TB = T * B
    Hr = Ho + 2                 # one spare pair-row keeps all tap slices in range
    Wr = Wo + 1
    L = Hr * Wr                 # flattened spatial length of one phase plane
    M2 = Ho * Wr                # matmul columns (one junk column per output row)
    K = 9 * C_in

    # ---- layout plumbing in XLA: one fused pad+stride-2-slice pass (int8) ----
    # TODO(synk): this remaining pad/phase pass over the spikes could be fused
    # into the LIF output with a halo-aware out BlockSpec.
    x = spikes.reshape(TB, C_in, H, W)
    xp = jnp.pad(x, ((0, 0), (0, 0), (1, 2 * Hr - H - 1), (1, 2 * Wr - W - 1)))
    pEE = xp[:, :, 0::2, 0::2].reshape(TB, C_in, L)
    pEO = xp[:, :, 0::2, 1::2].reshape(TB, C_in, L)
    pOE = xp[:, :, 1::2, 0::2].reshape(TB, C_in, L)
    pOO = xp[:, :, 1::2, 1::2].reshape(TB, C_in, L)

    # ---- weights: fold BN scale, bf16 hi/lo split (keeps ~f32 accuracy) ----
    scale = bn_scale.astype(jnp.float32)
    w2 = jnp.transpose(weight, (0, 2, 3, 1)).reshape(C_out, K).astype(jnp.float32)
    w2 = w2 * scale[:, None]                              # exact: conv linear in w
    w_hi = w2.astype(jnp.bfloat16)
    w_lo = (w2 - w_hi.astype(jnp.float32)).astype(jnp.bfloat16)
    bias2 = bn_bias.astype(jnp.float32).reshape(C_out, 1)

    # ---- images per grid step, from an explicit VMEM budget ----
    cap, limit = _vmem_budget()
    itm = spikes.dtype.itemsize
    per_img = (4 * 2 * C_in * L * itm      # phase blocks (double-buffered)
               + 2 * 4 * C_out * M2        # output block (f32, double-buffered)
               + 4 * 2 * C_in * L          # in-kernel bf16 phase temporaries
               + 4 * C_out * M2)           # in-kernel f32 matmul result
    fixed = (2 * 2 * 2 * C_out * K         # w_hi + w_lo (bf16, 2 buffers each)
             + 2 * 4 * C_out               # bias
             + 2 * K * M2)                 # patch scratch (bf16)
    budget = int(limit * 0.6)
    tb_cap = max(1, (budget - fixed) // per_img) if budget > fixed else 1
    tb_cap = int(min(tb_cap, 8))
    divisors = [d for d in range(1, TB + 1) if TB % d == 0 and d <= tb_cap]
    pref = [d for d in divisors if TB // d >= 2]          # >=2 grid steps (v7x)
    tb_tile = max(pref) if pref else max(divisors)

    kernel = _make_conv_kernel(tb_tile, C_in, Wr, M2)
    flops = 2 * 2 * TB * M2 * K * C_out                   # hi + lo matmuls
    bytes_accessed = (4 * TB * C_in * L * itm + 2 * 2 * C_out * K
                      + 4 * C_out + 4 * TB * C_out * M2)

    out = pl.pallas_call(
        kernel,
        out_shape=jax.ShapeDtypeStruct((TB, C_out, M2), jnp.float32),
        grid_spec=pltpu.PrefetchScalarGridSpec(
            num_scalar_prefetch=0,
            grid=(TB // tb_tile,),
            in_specs=[
                pl.BlockSpec((tb_tile, C_in, L), lambda i: (i, 0, 0)),
                pl.BlockSpec((tb_tile, C_in, L), lambda i: (i, 0, 0)),
                pl.BlockSpec((tb_tile, C_in, L), lambda i: (i, 0, 0)),
                pl.BlockSpec((tb_tile, C_in, L), lambda i: (i, 0, 0)),
                pl.BlockSpec((C_out, K), lambda i: (0, 0)),   # resident weights
                pl.BlockSpec((C_out, K), lambda i: (0, 0)),
                pl.BlockSpec((C_out, 1), lambda i: (0, 0)),
            ],
            out_specs=pl.BlockSpec((tb_tile, C_out, M2), lambda i: (i, 0, 0)),
            scratch_shapes=[pltpu.VMEM((K, M2), jnp.bfloat16)],
        ),
        compiler_params=pltpu.CompilerParams(
            dimension_semantics=("parallel",),
            vmem_limit_bytes=limit),
        cost_estimate=pl.CostEstimate(
            flops=flops, transcendentals=0, bytes_accessed=bytes_accessed),
    )(pEE, pEO, pOE, pOO, w_hi, w_lo, bias2)

    # strip the junk column and restore PyTorch NCHW layout (no transpose needed)
    out = out.reshape(T, B, C_out, Ho, Wr)[..., :Wo]
    return out


def downsample_layer(x, weight, gamma, beta, running_mean, running_var):
    spikes = lif_forward(x)
    # TODO(synk): BatchNorm implemented in inference mode (folded running stats);
    # training-mode batch statistics / running-stat updates are not computed.
    scale = gamma / jnp.sqrt(running_var + BN_EPS)
    bias = beta - running_mean * scale
    return conv3x3_bn_forward(spikes, weight, scale, bias)


# ------------------------------ pure-JAX reference ---------------------------
def _reference(x, weight, gamma, beta, mean, var):
    T, B = x.shape[0], x.shape[1]

    def step(v, x_t):
        v = v + (x_t - (v - V_RESET)) / TAU
        spike = (v >= V_TH).astype(x.dtype)
        v = (1.0 - spike) * v + spike * V_RESET
        return v, spike

    _, spikes = lax.scan(step, jnp.zeros_like(x[0]), x)
    s = spikes.reshape(T * B, *x.shape[2:])
    y = lax.conv_general_dilated(
        s, weight, window_strides=(2, 2), padding=((1, 1), (1, 1)),
        dimension_numbers=("NCHW", "OIHW", "NCHW"),
        precision=lax.Precision.HIGHEST)
    scl = (gamma / jnp.sqrt(var + BN_EPS)).reshape(1, -1, 1, 1)
    bia = (beta - mean * gamma / jnp.sqrt(var + BN_EPS)).reshape(1, -1, 1, 1)
    y = y * scl + bia
    return y.reshape(T, B, weight.shape[0], y.shape[-2], y.shape[-1])


if __name__ == "__main__":
    key = jax.random.PRNGKey(0)
    T, B, C_in, H, W, C_out = 2, 2, 4, 16, 16, 8
    k1, k2, k3, k4, k5, k6 = jax.random.split(key, 6)

    x = jax.random.normal(k1, (T, B, C_in, H, W), jnp.float32) * 2.0
    bound = 1.0 / ((C_in * 9) ** 0.5)  # ~ PyTorch Conv2d kaiming_uniform bound
    weight = jax.random.uniform(k2, (C_out, C_in, 3, 3), jnp.float32, -bound, bound)
    gamma = jax.random.uniform(k3, (C_out,), jnp.float32, 0.5, 1.5)
    beta = jax.random.normal(k4, (C_out,), jnp.float32) * 0.1
    running_mean = jax.random.normal(k5, (C_out,), jnp.float32) * 0.1
    running_var = jax.random.uniform(k6, (C_out,), jnp.float32, 0.5, 1.5)

    out = jax.block_until_ready(
        downsample_layer(x, weight, gamma, beta, running_mean, running_var))

    ref = _reference(x, weight, gamma, beta, running_mean, running_var)
    assert out.shape == (T, B, C_out, H // 2, W // 2), out.shape
    assert jnp.allclose(out, ref, atol=2e-3, rtol=2e-3), float(jnp.abs(out - ref).max())
    print("KERNEL_OK")
</pallas_src>

<mosaic_0001>
module attributes {stable_mosaic.version = 11 : i64} {
  func.func @_lif_kernel(%arg0: i32, %arg1: memref<2x32x128xf32, #tpu.memory_space<vmem>>, %arg2: memref<2x32x128xi8, #tpu.memory_space<vmem>>, %arg3: memref<32x128xf32, #tpu.memory_space<vmem>>) attributes {dimension_semantics = [#tpu.dimension_semantics<parallel>], iteration_bounds = array<i64: 1>, scalar_prefetch = 0 : i64, scratch_operands = 1 : i64, tpu.core_type = #tpu.core_type<tc>, window_params = [{transform_indices = @transform_0, window_bounds = array<i64: 2, 32, 128>}, {transform_indices = @transform_1, window_bounds = array<i64: 2, 32, 128>}]} {
    %cst = arith.constant 0.000000e+00 : f32
    %0 = vector.broadcast %cst : f32 to vector<32x128xf32>
    %c0 = arith.constant 0 : index
    %c0_0 = arith.constant 0 : index
    %1 = vector.load %arg3[%c0, %c0_0] : memref<32x128xf32, #tpu.memory_space<vmem>>, vector<32x128xf32>
    tpu.vector_store %arg3[%c0, %c0_0], %0 {strides = array<i32>} : memref<32x128xf32, #tpu.memory_space<vmem>>, vector<32x128xf32>,
    %c0_1 = arith.constant 0 : index
    %c0_2 = arith.constant 0 : index
    %2 = vector.load %arg3[%c0_1, %c0_2] : memref<32x128xf32, #tpu.memory_space<vmem>>, vector<32x128xf32>
    %c0_3 = arith.constant 0 : index
    %c0_4 = arith.constant 0 : index
    %c0_5 = arith.constant 0 : index
    %3 = vector.load %arg1[%c0_3, %c0_4, %c0_5] : memref<2x32x128xf32, #tpu.memory_space<vmem>>, vector<1x32x128xf32>
    %4 = vector.shape_cast %3 : vector<1x32x128xf32> to vector<32x128xf32>
    %cst_6 = arith.constant 0.000000e+00 : f32
    %5 = vector.broadcast %cst_6 : f32 to vector<32x128xf32>
    %6 = arith.subf %2, %5 : vector<32x128xf32>
    %7 = arith.subf %4, %6 : vector<32x128xf32>
    %cst_7 = arith.constant 5.000000e-01 : f32
    %8 = vector.broadcast %cst_7 : f32 to vector<32x128xf32>
    %9 = arith.mulf %7, %8 : vector<32x128xf32>
    %10 = arith.addf %2, %9 : vector<32x128xf32>
    %cst_8 = arith.constant 1.000000e+00 : f32
    %11 = vector.broadcast %cst_8 : f32 to vector<32x128xf32>
    %12 = arith.cmpf oge, %10, %11 : vector<32x128xf32>
    %13 = arith.extui %12 : vector<32x128xi1> to vector<32x128xi8>
    %c0_9 = arith.constant 0 : index
    %c0_10 = arith.constant 0 : index
    %c0_11 = arith.constant 0 : index
    %14 = vector.load %arg2[%c0_9, %c0_10, %c0_11] : memref<2x32x128xi8, #tpu.memory_space<vmem>>, vector<1x32x128xi8>
    %15 = vector.shape_cast %14 : vector<1x32x128xi8> to vector<32x128xi8>
    %16 = vector.shape_cast %13 : vector<32x128xi8> to vector<1x32x128xi8>
    tpu.vector_store %arg2[%c0_9, %c0_10, %c0_11], %16 {strides = array<i32>} : memref<2x32x128xi8, #tpu.memory_space<vmem>>, vector<1x32x128xi8>,
    %cst_12 = arith.constant 0.000000e+00 : f32
    %17 = vector.broadcast %cst_12 : f32 to vector<32x128xf32>
    %18 = arith.select %12, %17, %10 : vector<32x128xi1>, vector<32x128xf32>
    %c0_13 = arith.constant 0 : index
    %c0_14 = arith.constant 0 : index
    %19 = vector.load %arg3[%c0_13, %c0_14] : memref<32x128xf32, #tpu.memory_space<vmem>>, vector<32x128xf32>
    tpu.vector_store %arg3[%c0_13, %c0_14], %18 {strides = array<i32>} : memref<32x128xf32, #tpu.memory_space<vmem>>, vector<32x128xf32>,
    %c0_15 = arith.constant 0 : index
    %c0_16 = arith.constant 0 : index
    %20 = vector.load %arg3[%c0_15, %c0_16] : memref<32x128xf32, #tpu.memory_space<vmem>>, vector<32x128xf32>
    %c1 = arith.constant 1 : index
    %c0_17 = arith.constant 0 : index
    %c0_18 = arith.constant 0 : index
    %21 = vector.load %arg1[%c1, %c0_17, %c0_18] : memref<2x32x128xf32, #tpu.memory_space<vmem>>, vector<1x32x128xf32>
    %22 = vector.shape_cast %21 : vector<1x32x128xf32> to vector<32x128xf32>
    %cst_19 = arith.constant 0.000000e+00 : f32
    %23 = vector.broadcast %cst_19 : f32 to vector<32x128xf32>
    %24 = arith.subf %20, %23 : vector<32x128xf32>
    %25 = arith.subf %22, %24 : vector<32x128xf32>
    %cst_20 = arith.constant 5.000000e-01 : f32
    %26 = vector.broadcast %cst_20 : f32 to vector<32x128xf32>
    %27 = arith.mulf %25, %26 : vector<32x128xf32>
    %28 = arith.addf %20, %27 : vector<32x128xf32>
    %cst_21 = arith.constant 1.000000e+00 : f32
    %29 = vector.broadcast %cst_21 : f32 to vector<32x128xf32>
    %30 = arith.cmpf oge, %28, %29 : vector<32x128xf32>
    %31 = arith.extui %30 : vector<32x128xi1> to vector<32x128xi8>
    %c1_22 = arith.constant 1 : index
    %c0_23 = arith.constant 0 : index
    %c0_24 = arith.constant 0 : index
    %32 = vector.load %arg2[%c1_22, %c0_23, %c0_24] : memref<2x32x128xi8, #tpu.memory_space<vmem>>, vector<1x32x128xi8>
    %33 = vector.shape_cast %32 : vector<1x32x128xi8> to vector<32x128xi8>
    %34 = vector.shape_cast %31 : vector<32x128xi8> to vector<1x32x128xi8>
    tpu.vector_store %arg2[%c1_22, %c0_23, %c0_24], %34 {strides = array<i32>} : memref<2x32x128xi8, #tpu.memory_space<vmem>>, vector<1x32x128xi8>,
    %cst_25 = arith.constant 0.000000e+00 : f32
    %35 = vector.broadcast %cst_25 : f32 to vector<32x128xf32>
    %36 = arith.select %30, %35, %28 : vector<32x128xi1>, vector<32x128xf32>
    %c0_26 = arith.constant 0 : index
    %c0_27 = arith.constant 0 : index
    %37 = vector.load %arg3[%c0_26, %c0_27] : memref<32x128xf32, #tpu.memory_space<vmem>>, vector<32x128xf32>
    tpu.vector_store %arg3[%c0_26, %c0_27], %36 {strides = array<i32>} : memref<32x128xf32, #tpu.memory_space<vmem>>, vector<32x128xf32>,
    return
  }
  func.func @transform_0(%arg0: i32) -> (i32, i32, i32) {
    %c0_i32 = arith.constant 0 : i32
    %c0_i32_0 = arith.constant 0 : i32
    %c0_i32_1 = arith.constant 0 : i32
    return %c0_i32, %arg0, %c0_i32_0 : i32, i32, i32
  }
  func.func @transform_1(%arg0: i32) -> (i32, i32, i32) {
    %c0_i32 = arith.constant 0 : i32
    %c0_i32_0 = arith.constant 0 : i32
    %c0_i32_1 = arith.constant 0 : i32
    return %c0_i32, %arg0, %c0_i32_0 : i32, i32, i32
  }
}

</mosaic_0001>

<bundles_post_ra>
// kernel: tpu_custom_call.1
= control target key start
LH: loop header
LB: loop body
LE: loop exit
PB: predicated region body
PF: predicated region fallthrough
CT: control target
= control target key end

     0   :  { %6 = vsyncpa [#allocation4], 0  ;;  %s198_s0 = inlined_call_operand.hbm [shape: f32[2,32,128], index: 0, kind: input, shape index: {}]   ;;  %s199_s1 = inlined_call_operand.hbm [shape: s8[2,32,128], index: 1, kind: output, shape index: {}]  }
   0x1   :  { %7 = vsyncpa [#allocation5], 0  ;;  %s171_s6 = smov [#allocation3]  }
   0x2   :  { %s13_s7 = sshll.u32 %s171_s6, 4  ;;  %s14_s7 = int_to_ptr.vmem [resolvable:$true] %s13_s7 }
   0x3   :  { %s135_s8 = scalar_lea.vmem %s14_s7, 1024  ;;  %p140_p1 = scmp.lt.s32.totalorder %s14_s7, %s14_s7 }
   0x4   :  { %p136_p0 = scmp.ne.s32.totalorder %s14_s7, %s135_s8  ;;  %p141_p2 = scmp.lt.s32.totalorder %s135_s8, %s135_s8 }
   0x6   :  { %p142_p3 = por %p141_p2, %p140_p1 }
   0x8   :  { %p143_p4 = pnand %p142_p3, %p136_p0 }
   0xa   :  { %146 = shalt.err (!%p143_p4)
}
   0xb   :  { %s172_s9 = smov 128   ;;  %s173_s10 = smov 8  }
   0xc   :  { %19 = dma.hbm_to_vmem [thread:$0]  %s198_s0, 1024, %s14_s7, [#allocation4], %s172_s9, %s172_s9, %s173_s10  }
   0xd   :  { %167 = dma.done.wait [#allocation4], 1024  }
   0xe   :  { %168 = vsyncadd [#allocation4], 4294966272  ;;  %v33_v0 = vld [vmem:[#allocation3] sm:$0xff]  ;;  %v34_v1 = vld [vmem:[#allocation3 + $0x8] sm:$0xff]  ;;  %v174_v20 = vmov 0   ;;  %s175_s0 = smov [#allocation6]  }
   0xf   :  { %v35_v2 = vld [vmem:[#allocation3 + $0x10] sm:$0xff]  ;;  %v36_v3 = vld [vmem:[#allocation3 + $0x18] sm:$0xff]  ;;  %v41_v4 = vmul.f32 0.5, %v33_v0  ;;  %v42_v5 = vmul.f32 0.5, %v34_v1  ;;  %v71_v8 = vld [vmem:[#allocation3 + $0x20] sm:$0xff]  ;;  %s110_s13 = sshll.u32 %s175_s0, 4  ;;  %s111_s13 = int_to_ptr.vmem [resolvable:$true] %s110_s13 }
  0x10   :  { %v43_v6 = vmul.f32 0.5, %v35_v2  ;;  %v44_v7 = vmul.f32 0.5, %v36_v3  ;;  %v72_v9 = vld [vmem:[#allocation3 + $0x28] sm:$0xff]  ;;  %v73_v10 = vld [vmem:[#allocation3 + $0x30] sm:$0xff]  ;;  %v74_v11 = vld [vmem:[#allocation3 + $0x38] sm:$0xff]  ;;  %s147_s14 = scalar_lea.vmem %s111_s13, 256  ;;  %p152_p6 = scmp.lt.s32.totalorder %s111_s13, %s111_s13 }
  0x11   :  { %vm49_vm0 = vcmp.ge.f32.partialorder %v41_v4, 1.0  ;;  %vm50_vm1 = vcmp.ge.f32.partialorder %v42_v5, 1.0  ;;  %p148_p5 = scmp.ne.s32.totalorder %s111_s13, %s147_s14  ;;  %p153_p7 = scmp.lt.s32.totalorder %s147_s14, %s147_s14 }
  0x12   :  { %vm51_vm2 = vcmp.ge.f32.partialorder %v43_v6, 1.0  ;;  %vm52_vm3 = vcmp.ge.f32.partialorder %v44_v7, 1.0  ;;  %vm53_vm4 = vmpackc.low %vm50_vm1, %vm49_vm0  ;;  %v58_v12 = vsel %vm49_vm0, 0.0, %v41_v4  ;;  %v59_v13 = vsel %vm50_vm1, 0.0, %v42_v5 }
  0x13   :  { %v60_v14 = vsel %vm51_vm2, 0.0, %v43_v6  ;;  %vm54_vm5 = vmpackc.low %vm52_vm3, %vm51_vm2  ;;  %v61_v15 = vsel %vm52_vm3, 0.0, %v44_v7  ;;  %v75_v16 = vsub.f32 %v71_v8, %v58_v12  ;;  %v76_v17 = vsub.f32 %v72_v9, %v59_v13  ;;  %p154_p8 = por %p153_p7, %p152_p6 }
  0x14   :  { %v77_v18 = vsub.f32 %v73_v10, %v60_v14  ;;  %vm55_vm6 = vmpackc.even %vm54_vm5, %vm53_vm4  ;;  %v78_v19 = vsub.f32 %v74_v11, %v61_v15 }
  0x15   :  { %v56_v21 = vsel %vm55_vm6, 16843009, %v174_v20  ;;  %v79_v22 = vmul.f32 0.5, %v75_v16  ;;  %v80_v23 = vmul.f32 0.5, %v76_v17  ;;  %p155_p9 = pnand %p154_p8, %p148_p5 }
  0x16   :  { %v81_v24 = vmul.f32 0.5, %v77_v18  ;;  %57 = vst [vmem:[#allocation6] sm:$0xff] %v56_v21  ;;  %v82_v25 = vmul.f32 0.5, %v78_v19 }
  0x17   :  { %v83_v26 = vadd.f32 %v79_v22, %v58_v12  ;;  %v84_v27 = vadd.f32 %v80_v23, %v59_v13 }
  0x18   :  { %v85_v28 = vadd.f32 %v81_v24, %v60_v14  ;;  %v86_v29 = vadd.f32 %v82_v25, %v61_v15 }
  0x19   :  { %vm87_vm7 = vcmp.ge.f32.partialorder %v83_v26, 1.0  ;;  %vm88_vm8 = vcmp.ge.f32.partialorder %v84_v27, 1.0 }
  0x1a   :  { %vm89_vm9 = vcmp.ge.f32.partialorder %v85_v28, 1.0  ;;  %vm90_vm10 = vcmp.ge.f32.partialorder %v86_v29, 1.0  ;;  %vm91_vm11 = vmpackc.low %vm88_vm8, %vm87_vm7 }
  0x1b   :  { %vm92_vm12 = vmpackc.low %vm90_vm10, %vm89_vm9 }
  0x1c   :  { %vm93_vm13 = vmpackc.even %vm92_vm12, %vm91_vm11 }
  0x1d   :  { %v94_v30 = vsel %vm93_vm13, 16843009, %v174_v20 }
  0x1e   :  { %96 = vst [vmem:[#allocation6 + $0x8] sm:$0xff] %v94_v30 }
  0x1f   :  { %158 = shalt.err (!%p155_p9)
}
  0x20   :  { %116 = dma.vmem_to_hbm [thread:$0]  %s111_s13, 256, %s199_s1, [#allocation5], %s172_s9, %s172_s9, %s173_s10  }
  0x21   :  { %169 = dma.done.wait [#allocation5], 256  }
  0x22   :  { %170 = vsyncadd [#allocation5], 4294967040 }
  0x23   :  { %120 = vsyncpa [#allocation4], 1 }
  0x24   :  { %121 = vsyncpa [#allocation5], 1 }

</bundles_post_ra>
